<compile_context>
chip_gen: v5e
topology: v5e:2x2
jax: 0.10.0
libtpu: 0.0.40
codegen_flags: <defaults>
</compile_context>

<pallas_src>
import jax
import jax.numpy as jnp
from jax import lax
from jax.experimental import pallas as pl
from jax.experimental.pallas import tpu as pltpu


def _round_up(v, m):
    return ((v + m - 1) // m) * m


def _vmem_limits():
    """Returns (scoped vmem limit handed to the compiler, budget we plan to use)."""
    try:
        cap = int(pltpu.get_tpu_info().vmem_capacity_bytes)
    except Exception:
        cap = 64 * 1024 * 1024            # conservative: v7x per-TC VMEM
    return (cap * 7) // 8, (cap * 2) // 3  # leave headroom for compiler scratch


# ------------------------------------------------------------------ ATT kernel
def _make_att_kernel(cache_x):
    def kernel(batch_row_ref,   # [1, TN]  int32  node -> graph id
               x_ref,           # [TN, D]  f32    node features (pipelined tile)
               invc_ref,        # [B, 1]   f32    1 / nodes-per-graph
               w_ref,           # [D, D]   f32    projection W
               out_ref,         # [B, D]   f32    resident output accumulator
               c_ref,           # [B, D]   f32    scratch: c = tanh(mean @ W)
               *xcache):        # optional [n_tiles, TN, D] f32 on-chip x cache
        phase = pl.program_id(0)
        t = pl.program_id(1)
        nt = pl.num_programs(1)

        B = out_ref.shape[0]
        TN = x_ref.shape[0]

        # On-the-fly one-hot [B, TN]: s_bt[b, n] = (batch[n] == b).
        # Padded nodes carry sentinel id B -> they hit no row.
        s_bt = (lax.broadcasted_iota(jnp.int32, (B, TN), 0)
                == batch_row_ref[...]).astype(jnp.float32)

        @pl.when(phase == 0)
        def _phase0():
            x = x_ref[...]
            if cache_x:
                xcache[0][t] = x            # keep tile on-chip for phase 1

            @pl.when(t == 0)
            def _():
                out_ref[...] = jnp.zeros_like(out_ref)
            # Segment sum  S @ x : contraction over TN (MXU friendly).
            out_ref[...] += jnp.dot(s_bt, x, preferred_element_type=jnp.float32)

            @pl.when(t == nt - 1)
            def _():
                mean = out_ref[...] * invc_ref[...]                  # [B, D]
                c_ref[...] = jnp.tanh(
                    jnp.dot(mean, w_ref[...], preferred_element_type=jnp.float32))

        @pl.when(phase == 1)
        def _phase1():
            x = xcache[0][t] if cache_x else x_ref[...]              # [TN, D]

            @pl.when(t == 0)
            def _():
                out_ref[...] = jnp.zeros_like(out_ref)
            c = c_ref[...]                                           # [B, D]
            # scores_bt[b, n] = <c[b, :], x[n, :]>  (contract over D) -> [B, TN]
            scores_bt = lax.dot_general(c, x, (((1,), (1,)), ((), ())),
                                        preferred_element_type=jnp.float32)
            # Own-graph score per node; stays lane-dense [1, TN].
            logits = jnp.sum(scores_bt * s_bt, axis=0, keepdims=True)
            alpha_row = jax.nn.sigmoid(logits)                       # [1, TN]
            # out += S @ diag(alpha) @ x  ==  (s_bt * alpha_row) @ x
            out_ref[...] += jnp.dot(s_bt * alpha_row, x,
                                    preferred_element_type=jnp.float32)
    return kernel


# ------------------------------------------------------------------ AVG kernel
def _avg_pool_kernel(batch_row_ref, x_ref, invc_ref, out_ref):
    t = pl.program_id(0)
    nt = pl.num_programs(0)
    B = out_ref.shape[0]
    TN = x_ref.shape[0]

    s_bt = (lax.broadcasted_iota(jnp.int32, (B, TN), 0)
            == batch_row_ref[...]).astype(jnp.float32)

    @pl.when(t == 0)
    def _():
        out_ref[...] = jnp.zeros_like(out_ref)
    out_ref[...] += jnp.dot(s_bt, x_ref[...],
                            preferred_element_type=jnp.float32)

    @pl.when(t == nt - 1)
    def _():
        out_ref[...] *= invc_ref[...]


# ------------------------------------------------------------------ wrapper
def global_pool_forward(x, batch, c_size, W, mode="ATT", tile_n=None, cache_x=None):
    """JAX wrapper matching global_pool.forward(x, batch, c_size).

    x      : [N, nhid] f32 node features
    batch  : [N]       int node -> graph id in [0, B) (any order)
    c_size : [B]       int nodes per graph
    W      : [nhid, nhid] f32 projection (raw Parameter: applied as mean @ W)
    """
    N, D = x.shape
    B = int(c_size.shape[0])
    B_pad = _round_up(max(B, 1), 8)
    D_pad = _round_up(D, 128)

    vmem_limit, budget = _vmem_limits()

    # --- VMEM-budget-driven tile_n (lane/sublane-padded accounting) -----------
    # resident: W (2 bufs), out (2 bufs) + c scratch, inv_cnt (2 bufs)
    resident = 4 * (2 * D_pad * D_pad + 3 * B_pad * D_pad + 2 * B_pad * 128)
    # per node row of a tile: pipelined x (2 bufs), batch-id row (8 sublanes,
    # 2 bufs), s_bt / scores / alpha-weighted temporaries (~4 x B_pad lanes)
    per_node = 4 * (2 * D_pad + 2 * 8 + 4 * B_pad)

    if tile_n is None:
        tile_n = max(budget - resident, per_node * 128) // per_node
    tile_n = max(128, (int(tile_n) // 128) * 128)         # multiple of 128 lanes
    tile_n = min(tile_n, 8192, _round_up(N, 128))         # never bigger than needed
    n_pad = _round_up(N, tile_n)
    n_tiles = n_pad // tile_n

    if n_pad != N:
        x = jnp.pad(x, ((0, n_pad - N), (0, 0)))
        # Sentinel graph id B for padded nodes -> they hit no one-hot row.
        batch = jnp.pad(batch, (0, n_pad - N), constant_values=B)

    batch_row = batch.astype(jnp.int32).reshape(1, n_pad)
    # TODO(synk): x could be streamed as bfloat16 (f32 accumulation kept) for up
    # to ~2x on the HBM roofline if model precision tolerates it; kept f32 here
    # for bitwise-close parity with the fp32 PyTorch reference.
    x = x.astype(jnp.float32)
    W = W.astype(jnp.float32)
    cnt = c_size.astype(jnp.float32)
    # Guard zero-node graphs (would otherwise produce inf/NaN).
    inv_cnt = jnp.where(cnt > 0, 1.0 / jnp.maximum(cnt, 1.0), 0.0).reshape(B, 1)

    out_shape = jax.ShapeDtypeStruct((B, D), jnp.float32)

    if mode == "ATT":
        cache_bytes = 4 * n_tiles * tile_n * D_pad
        if cache_x is None:
            cache_x = (resident + tile_n * per_node + cache_bytes) <= budget
        cache_x = bool(cache_x)

        if cache_x:
            # Phase 1 pins the x block index to 0 -> Pallas elides the re-DMA;
            # phase 1 reads x from the VMEM cache filled in phase 0.
            x_index = lambda p, t: (t * (1 - p), 0)
        else:
            x_index = lambda p, t: (t, 0)                 # re-stream x in phase 1

        scratch = [pltpu.VMEM((B, D), jnp.float32)]       # c = tanh(mean @ W)
        if cache_x:
            scratch.append(pltpu.VMEM((n_tiles, tile_n, D), jnp.float32))

        x_passes = 1 if cache_x else 2
        cost = pl.CostEstimate(
            flops=int(6 * B * n_pad * D + 2 * B * D * D),
            transcendentals=int(B * D + n_pad),
            bytes_accessed=int(x_passes * n_pad * D * 4 + n_pad * 4
                               + D * D * 4 + B * D * 4 + B * 4),
        )
        return pl.pallas_call(
            _make_att_kernel(cache_x),
            out_shape=out_shape,
            grid_spec=pltpu.PrefetchScalarGridSpec(
                num_scalar_prefetch=0,
                grid=(2, n_tiles),                        # (phase, node tile)
                in_specs=[
                    pl.BlockSpec((1, tile_n), lambda p, t: (0, t)),   # batch ids
                    pl.BlockSpec((tile_n, D), x_index),               # x tile
                    pl.BlockSpec((B, 1), lambda p, t: (0, 0)),        # inv_cnt
                    pl.BlockSpec((D, D), lambda p, t: (0, 0)),        # W (resident)
                ],
                out_specs=pl.BlockSpec((B, D), lambda p, t: (0, 0)),  # accumulator
                scratch_shapes=scratch,
            ),
            compiler_params=pltpu.CompilerParams(
                # Both axes carry dependencies (tile axis: accumulator; phase
                # axis: phase-1 reads phase-0's scratch), so neither is parallel.
                dimension_semantics=("arbitrary", "arbitrary"),
                vmem_limit_bytes=int(vmem_limit),
            ),
            cost_estimate=cost,
        )(batch_row, x, inv_cnt, W)

    elif mode == "AVG":
        cost = pl.CostEstimate(
            flops=int(2 * B * n_pad * D),
            transcendentals=0,
            bytes_accessed=int(n_pad * D * 4 + n_pad * 4 + B * D * 4 + B * 4),
        )
        return pl.pallas_call(
            _avg_pool_kernel,
            out_shape=out_shape,
            grid_spec=pltpu.PrefetchScalarGridSpec(
                num_scalar_prefetch=0,
                grid=(n_tiles,),
                in_specs=[
                    pl.BlockSpec((1, tile_n), lambda t: (0, t)),
                    pl.BlockSpec((tile_n, D), lambda t: (t, 0)),
                    pl.BlockSpec((B, 1), lambda t: (0, 0)),
                ],
                out_specs=pl.BlockSpec((B, D), lambda t: (0, 0)),
            ),
            compiler_params=pltpu.CompilerParams(
                dimension_semantics=("arbitrary",),       # accumulator across tiles
                vmem_limit_bytes=int(vmem_limit),
            ),
            cost_estimate=cost,
        )(batch_row, x, inv_cnt)
    else:
        raise ValueError(f"unknown GLOBAL_POOL mode: {mode}")


if __name__ == "__main__":
    key = jax.random.PRNGKey(0)
    nhid = 32
    B = 4
    c_size = jnp.array([40, 56, 33, 71], dtype=jnp.int32)       # nodes per graph
    N = int(c_size.sum())                                        # 200 nodes
    batch = jnp.repeat(jnp.arange(B, dtype=jnp.int32), c_size,
                       total_repeat_length=N)

    kx, kw = jax.random.split(key)
    x = jax.random.normal(kx, (N, nhid), dtype=jnp.float32)
    # Deterministic parameter init (cfg['INIT'] == 'NORMAL': standard normal).
    W = jax.random.normal(kw, (nhid, nhid), dtype=jnp.float32)

    # Pure-JAX reference mirroring the PyTorch forward.
    S = (batch[None, :] == jnp.arange(B)[:, None]).astype(jnp.float32)   # [B, N]
    x_mean = (S @ x) / c_size.astype(jnp.float32)[:, None]
    c = jnp.tanh(x_mean @ W)
    alpha = jax.nn.sigmoid(jnp.sum(x * c[batch], axis=1, keepdims=True))
    ref_att = S @ (x * alpha)
    ref_avg = x_mean

    # Auto-tiled (budget-driven) path plus forced multi-tile paths, exercising
    # both the VMEM-cached and the x-re-streaming phase-1 variants.
    out_att_auto = jax.block_until_ready(
        global_pool_forward(x, batch, c_size, W, mode="ATT"))
    out_att_cached = jax.block_until_ready(
        global_pool_forward(x, batch, c_size, W, mode="ATT",
                            tile_n=128, cache_x=True))
    out_att_stream = jax.block_until_ready(
        global_pool_forward(x, batch, c_size, W, mode="ATT",
                            tile_n=128, cache_x=False))
    out_avg = jax.block_until_ready(
        global_pool_forward(x, batch, c_size, W, mode="AVG", tile_n=128))

    for out in (out_att_auto, out_att_cached, out_att_stream):
        assert out.shape == (B, nhid)
        assert jnp.allclose(out, ref_att, atol=1e-4, rtol=1e-4), \
            float(jnp.max(jnp.abs(out - ref_att)))
    assert out_avg.shape == (B, nhid)
    assert jnp.allclose(out_avg, ref_avg, atol=1e-5, rtol=1e-5), \
        float(jnp.max(jnp.abs(out_avg - ref_avg)))

    print("KERNEL_OK")
</pallas_src>

<mosaic_0001>
module attributes {stable_mosaic.version = 11 : i64} {
  func.func @kernel(%arg0: i32, %arg1: i32, %arg2: memref<1x256xi32, #tpu.memory_space<vmem>>, %arg3: memref<256x32xf32, #tpu.memory_space<vmem>>, %arg4: memref<4x1xf32, #tpu.memory_space<vmem>>, %arg5: memref<32x32xf32, #tpu.memory_space<vmem>>, %arg6: memref<4x32xf32, #tpu.memory_space<vmem>>, %arg7: memref<4x32xf32, #tpu.memory_space<vmem>>, %arg8: memref<1x256x32xf32, #tpu.memory_space<vmem>>) attributes {dimension_semantics = [#tpu.dimension_semantics<arbitrary>, #tpu.dimension_semantics<arbitrary>], iteration_bounds = array<i64: 2, 1>, scalar_prefetch = 0 : i64, scratch_operands = 2 : i64, tpu.core_type = #tpu.core_type<tc>, window_params = [{transform_indices = @transform_0, window_bounds = array<i64: 1, 256>}, {transform_indices = @transform_1, window_bounds = array<i64: 256, 32>}, {pipeline_mode = #tpu.pipeline_mode<synchronous>, transform_indices = @transform_2, window_bounds = array<i64: 4, 1>}, {pipeline_mode = #tpu.pipeline_mode<synchronous>, transform_indices = @transform_3, window_bounds = array<i64: 32, 32>}, {pipeline_mode = #tpu.pipeline_mode<synchronous>, transform_indices = @transform_4, window_bounds = array<i64: 4, 32>}]} {
    %0 = tpu.iota {dimensions = array<i32: 0>} : vector<4x256xi32>
    %c0 = arith.constant 0 : index
    %c0_0 = arith.constant 0 : index
    %1 = vector.load %arg2[%c0, %c0_0] : memref<1x256xi32, #tpu.memory_space<vmem>>, vector<1x256xi32>
    %2 = vector.broadcast %1 : vector<1x256xi32> to vector<4x256xi32>
    %3 = arith.cmpi eq, %0, %2 : vector<4x256xi32>
    %4 = arith.extui %3 : vector<4x256xi1> to vector<4x256xi32>
    %5 = arith.sitofp %4 : vector<4x256xi32> to vector<4x256xf32>
    %c0_i32 = arith.constant 0 : i32
    %6 = arith.cmpi eq, %arg0, %c0_i32 : i32
    %7 = arith.extui %6 : i1 to i32
    %c0_i32_1 = arith.constant 0 : i32
    %8 = arith.cmpi ne, %7, %c0_i32_1 : i32
    scf.if %8 {
      %c0_3 = arith.constant 0 : index
      %c0_4 = arith.constant 0 : index
      %12 = vector.load %arg3[%c0_3, %c0_4] : memref<256x32xf32, #tpu.memory_space<vmem>>, vector<256x32xf32>
      %13 = arith.index_cast %arg1 : i32 to index
      %c0_5 = arith.constant 0 : index
      %c0_6 = arith.constant 0 : index
      %14 = vector.load %arg8[%13, %c0_5, %c0_6] : memref<1x256x32xf32, #tpu.memory_space<vmem>>, vector<1x256x32xf32>
      %15 = vector.shape_cast %14 : vector<1x256x32xf32> to vector<256x32xf32>
      %16 = vector.shape_cast %12 : vector<256x32xf32> to vector<1x256x32xf32>
      tpu.vector_store %arg8[%13, %c0_5, %c0_6], %16 {strides = array<i32>} : memref<1x256x32xf32, #tpu.memory_space<vmem>>, vector<1x256x32xf32>,
      %c0_i32_7 = arith.constant 0 : i32
      %17 = arith.cmpi eq, %arg1, %c0_i32_7 : i32
      %18 = arith.extui %17 : i1 to i32
      %c0_i32_8 = arith.constant 0 : i32
      %19 = arith.cmpi ne, %18, %c0_i32_8 : i32
      scf.if %19 {
        %cst_15 = arith.constant 0.000000e+00 : f32
        %27 = vector.broadcast %cst_15 : f32 to vector<4x32xf32>
        %c0_16 = arith.constant 0 : index
        %c0_17 = arith.constant 0 : index
        %28 = vector.load %arg6[%c0_16, %c0_17] : memref<4x32xf32, #tpu.memory_space<vmem>>, vector<4x32xf32>
        tpu.vector_store %arg6[%c0_16, %c0_17], %27 {strides = array<i32>} : memref<4x32xf32, #tpu.memory_space<vmem>>, vector<4x32xf32>,
      } else {
      }
      %c0_9 = arith.constant 0 : index
      %c0_10 = arith.constant 0 : index
      %20 = vector.load %arg6[%c0_9, %c0_10] : memref<4x32xf32, #tpu.memory_space<vmem>>, vector<4x32xf32>
      %cst = arith.constant dense<0.000000e+00> : vector<4x32xf32>
      %21 = tpu.matmul %5, %12, %cst {dimension_numbers = #tpu.dot_dimension_numbers<[1], [0], [0], [1], [0, 0, 1, 1], [], []>} : vector<4x256xf32>, vector<256x32xf32>, vector<4x32xf32> -> vector<4x32xf32>
      %22 = arith.addf %20, %21 : vector<4x32xf32>
      %c0_11 = arith.constant 0 : index
      %c0_12 = arith.constant 0 : index
      %23 = vector.load %arg6[%c0_11, %c0_12] : memref<4x32xf32, #tpu.memory_space<vmem>>, vector<4x32xf32>
      tpu.vector_store %arg6[%c0_11, %c0_12], %22 {strides = array<i32>} : memref<4x32xf32, #tpu.memory_space<vmem>>, vector<4x32xf32>,
      %c0_i32_13 = arith.constant 0 : i32
      %24 = arith.cmpi eq, %arg1, %c0_i32_13 : i32
      %25 = arith.extui %24 : i1 to i32
      %c0_i32_14 = arith.constant 0 : i32
      %26 = arith.cmpi ne, %25, %c0_i32_14 : i32
      scf.if %26 {
        %c0_15 = arith.constant 0 : index
        %c0_16 = arith.constant 0 : index
        %27 = vector.load %arg6[%c0_15, %c0_16] : memref<4x32xf32, #tpu.memory_space<vmem>>, vector<4x32xf32>
        %c0_17 = arith.constant 0 : index
        %c0_18 = arith.constant 0 : index
        %28 = vector.load %arg4[%c0_17, %c0_18] : memref<4x1xf32, #tpu.memory_space<vmem>>, vector<4x1xf32>
        %29 = vector.broadcast %28 : vector<4x1xf32> to vector<4x32xf32>
        %30 = arith.mulf %27, %29 : vector<4x32xf32>
        %c0_19 = arith.constant 0 : index
        %c0_20 = arith.constant 0 : index
        %31 = vector.load %arg5[%c0_19, %c0_20] : memref<32x32xf32, #tpu.memory_space<vmem>>, vector<32x32xf32>
        %cst_21 = arith.constant dense<0.000000e+00> : vector<4x32xf32>
        %32 = tpu.matmul %30, %31, %cst_21 {dimension_numbers = #tpu.dot_dimension_numbers<[1], [0], [0], [1], [0, 0, 1, 1], [], []>} : vector<4x32xf32>, vector<32x32xf32>, vector<4x32xf32> -> vector<4x32xf32>
        %33 = math.tanh %32 : vector<4x32xf32>
        %c0_22 = arith.constant 0 : index
        %c0_23 = arith.constant 0 : index
        %34 = vector.load %arg7[%c0_22, %c0_23] : memref<4x32xf32, #tpu.memory_space<vmem>>, vector<4x32xf32>
        tpu.vector_store %arg7[%c0_22, %c0_23], %33 {strides = array<i32>} : memref<4x32xf32, #tpu.memory_space<vmem>>, vector<4x32xf32>,
      } else {
      }
    } else {
    }
    %c1_i32 = arith.constant 1 : i32
    %9 = arith.cmpi eq, %arg0, %c1_i32 : i32
    %10 = arith.extui %9 : i1 to i32
    %c0_i32_2 = arith.constant 0 : i32
    %11 = arith.cmpi ne, %10, %c0_i32_2 : i32
    scf.if %11 {
      %12 = arith.index_cast %arg1 : i32 to index
      %c0_3 = arith.constant 0 : index
      %c0_4 = arith.constant 0 : index
      %13 = vector.load %arg8[%12, %c0_3, %c0_4] : memref<1x256x32xf32, #tpu.memory_space<vmem>>, vector<1x256x32xf32>
      %14 = vector.shape_cast %13 : vector<1x256x32xf32> to vector<256x32xf32>
      %c0_i32_5 = arith.constant 0 : i32
      %15 = arith.cmpi eq, %arg1, %c0_i32_5 : i32
      %16 = arith.extui %15 : i1 to i32
      %c0_i32_6 = arith.constant 0 : i32
      %17 = arith.cmpi ne, %16, %c0_i32_6 : i32
      scf.if %17 {
        %cst_16 = arith.constant 0.000000e+00 : f32
        %34 = vector.broadcast %cst_16 : f32 to vector<4x32xf32>
        %c0_17 = arith.constant 0 : index
        %c0_18 = arith.constant 0 : index
        %35 = vector.load %arg6[%c0_17, %c0_18] : memref<4x32xf32, #tpu.memory_space<vmem>>, vector<4x32xf32>
        tpu.vector_store %arg6[%c0_17, %c0_18], %34 {strides = array<i32>} : memref<4x32xf32, #tpu.memory_space<vmem>>, vector<4x32xf32>,
      } else {
      }
      %c0_7 = arith.constant 0 : index
      %c0_8 = arith.constant 0 : index
      %18 = vector.load %arg7[%c0_7, %c0_8] : memref<4x32xf32, #tpu.memory_space<vmem>>, vector<4x32xf32>
      %cst = arith.constant dense<0.000000e+00> : vector<4x256xf32>
      %19 = tpu.matmul %18, %14, %cst {dimension_numbers = #tpu.dot_dimension_numbers<[1], [1], [0], [0], [0, 0, 1, 0], [], []>} : vector<4x32xf32>, vector<256x32xf32>, vector<4x256xf32> -> vector<4x256xf32>
      %20 = arith.mulf %19, %5 : vector<4x256xf32>
      %cst_9 = arith.constant dense<0.000000e+00> : vector<256xf32>
      %21 = vector.multi_reduction <add>, %20, %cst_9 [0] : vector<4x256xf32> to vector<256xf32>
      %22 = vector.shape_cast %21 : vector<256xf32> to vector<1x256xf32>
      %23 = arith.negf %22 : vector<1x256xf32>
      %24 = math.exp %23 : vector<1x256xf32>
      %cst_10 = arith.constant 1.000000e+00 : f32
      %25 = vector.broadcast %cst_10 : f32 to vector<1x256xf32>
      %26 = arith.addf %25, %24 : vector<1x256xf32>
      %27 = arith.divf %25, %26 : vector<1x256xf32>
      %c0_11 = arith.constant 0 : index
      %c0_12 = arith.constant 0 : index
      %28 = vector.load %arg6[%c0_11, %c0_12] : memref<4x32xf32, #tpu.memory_space<vmem>>, vector<4x32xf32>
      %29 = vector.broadcast %27 : vector<1x256xf32> to vector<4x256xf32>
      %30 = arith.mulf %5, %29 : vector<4x256xf32>
      %cst_13 = arith.constant dense<0.000000e+00> : vector<4x32xf32>
      %31 = tpu.matmul %30, %14, %cst_13 {dimension_numbers = #tpu.dot_dimension_numbers<[1], [0], [0], [1], [0, 0, 1, 1], [], []>} : vector<4x256xf32>, vector<256x32xf32>, vector<4x32xf32> -> vector<4x32xf32>
      %32 = arith.addf %28, %31 : vector<4x32xf32>
      %c0_14 = arith.constant 0 : index
      %c0_15 = arith.constant 0 : index
      %33 = vector.load %arg6[%c0_14, %c0_15] : memref<4x32xf32, #tpu.memory_space<vmem>>, vector<4x32xf32>
      tpu.vector_store %arg6[%c0_14, %c0_15], %32 {strides = array<i32>} : memref<4x32xf32, #tpu.memory_space<vmem>>, vector<4x32xf32>,
    } else {
    }
    return
  }
  func.func @transform_0(%arg0: i32, %arg1: i32) -> (i32, i32) {
    %c0_i32 = arith.constant 0 : i32
    %c0_i32_0 = arith.constant 0 : i32
    return %c0_i32, %arg1 : i32, i32
  }
  func.func @transform_1(%arg0: i32, %arg1: i32) -> (i32, i32) {
    %c1_i32 = arith.constant 1 : i32
    %0 = arith.subi %c1_i32, %arg0 : i32
    %1 = arith.muli %arg1, %0 : i32
    %c0_i32 = arith.constant 0 : i32
    %c0_i32_0 = arith.constant 0 : i32
    return %1, %c0_i32 : i32, i32
  }
  func.func @transform_2(%arg0: i32, %arg1: i32) -> (i32, i32) {
    %c0_i32 = arith.constant 0 : i32
    %c0_i32_0 = arith.constant 0 : i32
    %c0_i32_1 = arith.constant 0 : i32
    return %c0_i32, %c0_i32_0 : i32, i32
  }
  func.func @transform_3(%arg0: i32, %arg1: i32) -> (i32, i32) {
    %c0_i32 = arith.constant 0 : i32
    %c0_i32_0 = arith.constant 0 : i32
    %c0_i32_1 = arith.constant 0 : i32
    return %c0_i32, %c0_i32_0 : i32, i32
  }
  func.func @transform_4(%arg0: i32, %arg1: i32) -> (i32, i32) {
    %c0_i32 = arith.constant 0 : i32
    %c0_i32_0 = arith.constant 0 : i32
    %c0_i32_1 = arith.constant 0 : i32
    return %c0_i32, %c0_i32_0 : i32, i32
  }
}

</mosaic_0001>

<bundles_post_ra>
// kernel: tpu_custom_call.1
= control target key start
LH: loop header
LB: loop body
LE: loop exit
PB: predicated region body
PF: predicated region fallthrough
CT: control target
= control target key end

     0   :  { %9 = vsyncpa [#allocation5], 0  ;;  %s949_s15 = smov 0   ;;  %s951_s16 = smov 0   ;;  %s1194_s0 = inlined_call_operand.vmem [shape: s32[1,256], index: 0, kind: input, shape index: {}]   ;;  %s1195_s1 = inlined_call_operand.vmem [shape: f32[256,32], index: 1, kind: input, shape index: {}]   ;;  %s1196_s2 = inlined_call_operand.vmem [shape: f32[4,1], index: 2, kind: input, shape index: {}]   ;;  %s1197_s3 = inlined_call_operand.vmem [shape: f32[32,32], index: 3, kind: input, shape index: {}]   ;;  %s1198_s4 = inlined_call_operand.hbm [shape: f32[4,32], index: 4, kind: output, shape index: {}]  }
   0x1   :  { %s953_s17 = smov 0  }
   0x2 LB: > { %s762_s18 = sadd.s32 4294967295, %s916_s17   ;;  %s27_s19 = sadd.s32 1, %s912_s16  ;;  %s916_s17 = sphi %s953_s17, %s15_s17   ;;  %s912_s16 = sphi %s951_s16, %s1204_s16   ;;  %s908_s15 = sphi %s949_s15, %s1203_s15  }
   0x3   : > { %p29_p0 = scmp.ge.s32.totalorder %s27_s19, 2  ;;  %p767_p1 = scmp.ge.s32.totalorder %s916_s17, 1 }
   0x4   : > { %p189_p2 = scmp.lt.s32.totalorder %s916_s17, 3 }
   0x5   : > { %s1206_s19 = smov (%p29_p0, %s27_s19), 0 }
   0x6   : > { %p190_p3 = pnand %p767_p1, %p189_p2 }
   0x7   : > { %p770_p4 = scmp.ne.s32.totalorder (!%p190_p3), %s908_s15, 0 }
   0x8   : > { %193 = sbr.rel (%p190_p3) target bundleno = 718 (0x2ce), region = 36 }
   0xd   : > { %v231_v0 = vlaneseq  ;;  %v233_v1 = vld [vmem:[%s1194_s0] sm:$0x3]  ;;  %v918_v7 = vmov 0.0  }
   0xe   : > { %v234_v2 = vperm.slane %v233_v1, 0  ;;  %v235_v3 = vperm.slane %v233_v1, 1  ;;  %245 = sbr.rel (%p770_p4) target bundleno = 332 (0x14c), region = 40 }
   0xf   : > { %v232_v4 = vshrl.u32 %v231_v0, 7 }
  0x11   : > { %vm973_vm0 = vcmp.eq.s32.totalorder %v232_v4, %v234_v2  ;;  %vm977_vm1 = vcmp.eq.s32.totalorder %v232_v4, %v235_v3 }
  0x12   : > { %v983_v8 = vsel %vm973_vm0, 1.0, %v918_v7  ;;  %v987_v9 = vsel %vm977_vm1, 1.0, %v918_v7 }
  0x13   : > { %v261_v10 = vld [vmem:[%s1195_s1 + $0x78] sm:$0xff]  ;;  %vm280_vm2 = vcmask 261120   ;;  %v260_v12 = vld [vmem:[%s1195_s1 + $0x70] sm:$0xff]  ;;  %v259_v14 = vld [vmem:[%s1195_s1 + $0x68] sm:$0xff]  ;;  %v919_v16 = vmov 0   ;;  %v920_v44 = vmov 1.0  }
  0x14   : > { %v277_v11 = vld [vmem:[%s1195_s1 + $0xf8] sm:$0xff]  ;;  %296 = vst.msk [vmem:[#allocation3 + $0x78] sm:$0xff] %vm280_vm2, %v261_v10  ;;  %320 = vmatpush.msra.mxu0 %v261_v10  ;;  %v276_v13 = vld [vmem:[%s1195_s1 + $0xf0] sm:$0xff]  ;;  %v275_v15 = vld [vmem:[%s1195_s1 + $0xe8] sm:$0xff]  ;;  %851 = vset.pattern.permute.xlu0 %v919_v16  ;;  %vm317_vm3 = vcmask 257024   ;;  %v921_v45 = vmov 0.0  }
  0x15   : > { %340 = vmatpush.msra.mxu1 %v277_v11  ;;  %312 = vst.msk [vmem:[#allocation3 + $0xf8] sm:$0xff] %vm280_vm2, %v277_v11  ;;  %v258_v17 = vld [vmem:[%s1195_s1 + $0x60] sm:$0xff]  ;;  %v257_v19 = vld [vmem:[%s1195_s1 + $0x58] sm:$0xff]  ;;  %v256_v21 = vld [vmem:[%s1195_s1 + $0x50] sm:$0xff] }
  0x16   : > { %295 = vst.msk [vmem:[#allocation3 + $0x70] sm:$0xff] %vm280_vm2, %v260_v12  ;;  %321 = vmatpush.msra.mxu0 %v260_v12  ;;  %v274_v18 = vld [vmem:[%s1195_s1 + $0xe0] sm:$0xff]  ;;  %v273_v20 = vld [vmem:[%s1195_s1 + $0xd8] sm:$0xff]  ;;  %v272_v22 = vld [vmem:[%s1195_s1 + $0xd0] sm:$0xff] }
  0x17   : > { %341 = vmatpush.msra.mxu1 %v276_v13  ;;  %311 = vst.msk [vmem:[#allocation3 + $0xf0] sm:$0xff] %vm280_vm2, %v276_v13  ;;  %v255_v23 = vld [vmem:[%s1195_s1 + $0x48] sm:$0xff]  ;;  %v367_v25 = vld [vmem:[%s1196_s2] sm:$0xf]  ;;  %v253_v28 = vld [vmem:[%s1195_s1 + $0x38] sm:$0xff] }
  0x18   : > { %294 = vst.msk [vmem:[#allocation3 + $0x68] sm:$0xff] %vm280_vm2, %v259_v14  ;;  %322 = vmatpush.msra.mxu0 %v259_v14  ;;  %v271_v24 = vld [vmem:[%s1195_s1 + $0xc8] sm:$0xff]  ;;  %v254_v26 = vld [vmem:[%s1195_s1 + $0x40] sm:$0xff]  ;;  %370 = vperm.xlu0 %851, %v367_v25   ;;  %v269_v29 = vld [vmem:[%s1195_s1 + $0xb8] sm:$0xff] }
  0x19   : > { %342 = vmatpush.msra.mxu1 %v275_v15  ;;  %310 = vst.msk [vmem:[#allocation3 + $0xe8] sm:$0xff] %vm280_vm2, %v275_v15  ;;  %v270_v27 = vld [vmem:[%s1195_s1 + $0xc0] sm:$0xff]  ;;  %v252_v30 = vld [vmem:[%s1195_s1 + $0x30] sm:$0xff]  ;;  %v251_v32 = vld [vmem:[%s1195_s1 + $0x28] sm:$0xff] }
  0x1a   : > { %293 = vst.msk [vmem:[#allocation3 + $0x60] sm:$0xff] %vm280_vm2, %v258_v17  ;;  %323 = vmatpush.msra.mxu0 %v258_v17  ;;  %v268_v31 = vld [vmem:[%s1195_s1 + $0xb0] sm:$0xff]  ;;  %v267_v33 = vld [vmem:[%s1195_s1 + $0xa8] sm:$0xff]  ;;  %v250_v34 = vld [vmem:[%s1195_s1 + $0x20] sm:$0xff] }
  0x1b   : > { %343 = vmatpush.msra.mxu1 %v274_v18  ;;  %309 = vst.msk [vmem:[#allocation3 + $0xe0] sm:$0xff] %vm280_vm2, %v274_v18  ;;  %v266_v35 = vld [vmem:[%s1195_s1 + $0xa0] sm:$0xff]  ;;  %v249_v36 = vld [vmem:[%s1195_s1 + $0x18] sm:$0xff]  ;;  %v248_v38 = vld [vmem:[%s1195_s1 + $0x10] sm:$0xff] }
  0x1c   : > { %292 = vst.msk [vmem:[#allocation3 + $0x58] sm:$0xff] %vm280_vm2, %v257_v19  ;;  %324 = vmatpush.msra.mxu0 %v257_v19  ;;  %v265_v37 = vld [vmem:[%s1195_s1 + $0x98] sm:$0xff]  ;;  %v264_v39 = vld [vmem:[%s1195_s1 + $0x90] sm:$0xff]  ;;  %v247_v40 = vld [vmem:[%s1195_s1 + $0x8] sm:$0xff] }
  0x1d   : > { %344 = vmatpush.msra.mxu1 %v273_v20  ;;  %308 = vst.msk [vmem:[#allocation3 + $0xd8] sm:$0xff] %vm280_vm2, %v273_v20  ;;  %v263_v41 = vld [vmem:[%s1195_s1 + $0x88] sm:$0xff]  ;;  %v246_v42 = vld [vmem:[%s1195_s1] sm:$0xff]  ;;  %v377_v46 = vld [vmem:[%s1197_s3 + $0x18] sm:$0xff] }
  0x1e   : > { %291 = vst.msk [vmem:[#allocation3 + $0x50] sm:$0xff] %vm280_vm2, %v256_v21  ;;  %325 = vmatpush.msra.mxu0 %v256_v21  ;;  %v262_v43 = vld [vmem:[%s1195_s1 + $0x80] sm:$0xff]  ;;  %v376_v47 = vld [vmem:[%s1197_s3 + $0x10] sm:$0xff]  ;;  %393 = vmatpush.msra.mxu2 %v377_v46  ;;  %v375_v48 = vld [vmem:[%s1197_s3 + $0x8] sm:$0xff] }
  0x1f   : > { %345 = vmatpush.msra.mxu1 %v272_v22  ;;  %307 = vst.msk [vmem:[#allocation3 + $0xd0] sm:$0xff] %vm280_vm2, %v272_v22  ;;  %v374_v49 = vld [vmem:[%s1197_s3] sm:$0xff] }
  0x20   : > { %290 = vst.msk [vmem:[#allocation3 + $0x48] sm:$0xff] %vm280_vm2, %v255_v23  ;;  %326 = vmatpush.msra.mxu0 %v255_v23  ;;  %394 = vmatpush.msra.mxu2 %v376_v47 }
  0x21   : > { %346 = vmatpush.msra.mxu1 %v271_v24  ;;  %306 = vst.msk [vmem:[#allocation3 + $0xc8] sm:$0xff] %vm280_vm2, %v271_v24 }
  0x22   : > { %289 = vst.msk [vmem:[#allocation3 + $0x40] sm:$0xff] %vm280_vm2, %v254_v26  ;;  %327 = vmatpush.msra.mxu0 %v254_v26  ;;  %395 = vmatpush.msra.mxu2 %v375_v48 }
  0x23   : > { %347 = vmatpush.msra.mxu1 %v270_v27  ;;  %305 = vst.msk [vmem:[#allocation3 + $0xc0] sm:$0xff] %vm280_vm2, %v270_v27 }
  0x24   : > { %288 = vst.msk [vmem:[#allocation3 + $0x38] sm:$0xff] %vm280_vm2, %v253_v28  ;;  %328 = vmatpush.msra.mxu0 %v253_v28  ;;  %396 = vmatpush.msra.mxu2 %v374_v49 }
  0x25   : > { %348 = vmatpush.msra.mxu1 %v269_v29  ;;  %304 = vst.msk [vmem:[#allocation3 + $0xb8] sm:$0xff] %vm280_vm2, %v269_v29 }
  0x26   : > { %287 = vst.msk [vmem:[#allocation3 + $0x30] sm:$0xff] %vm280_vm2, %v252_v30  ;;  %329 = vmatpush.msra.mxu0 %v252_v30 }
  0x27   : > { %349 = vmatpush.msra.mxu1 %v268_v31  ;;  %303 = vst.msk [vmem:[#allocation3 + $0xb0] sm:$0xff] %vm280_vm2, %v268_v31 }
  0x28   : > { %286 = vst.msk [vmem:[#allocation3 + $0x28] sm:$0xff] %vm280_vm2, %v251_v32  ;;  %330 = vmatpush.msra.mxu0 %v251_v32 }
  0x29   : > { %350 = vmatpush.msra.mxu1 %v267_v33  ;;  %302 = vst.msk [vmem:[#allocation3 + $0xa8] sm:$0xff] %vm280_vm2, %v267_v33 }
  0x2a   : > { %285 = vst.msk [vmem:[#allocation3 + $0x20] sm:$0xff] %vm280_vm2, %v250_v34  ;;  %331 = vmatpush.msra.mxu0 %v250_v34 }
  0x2b   : > { %351 = vmatpush.msra.mxu1 %v266_v35  ;;  %301 = vst.msk [vmem:[#allocation3 + $0xa0] sm:$0xff] %vm280_vm2, %v266_v35 }
  0x2c   : > { %284 = vst.msk [vmem:[#allocation3 + $0x18] sm:$0xff] %vm280_vm2, %v249_v36  ;;  %332 = vmatpush.msra.mxu0 %v249_v36 }
  0x2d   : > { %352 = vmatpush.msra.mxu1 %v265_v37  ;;  %300 = vst.msk [vmem:[#allocation3 + $0x98] sm:$0xff] %vm280_vm2, %v265_v37 }
  0x2e   : > { %283 = vst.msk [vmem:[#allocation3 + $0x10] sm:$0xff] %vm280_vm2, %v248_v38  ;;  %333 = vmatpush.msra.mxu0 %v248_v38 }
  0x2f   : > { %353 = vmatpush.msra.mxu1 %v264_v39  ;;  %299 = vst.msk [vmem:[#allocation3 + $0x90] sm:$0xff] %vm280_vm2, %v264_v39 }
  0x30   : > { %282 = vst.msk [vmem:[#allocation3 + $0x8] sm:$0xff] %vm280_vm2, %v247_v40  ;;  %334 = vmatpush.msra.mxu0 %v247_v40 }
  0x31   : > { %354 = vmatpush.msra.mxu1 %v263_v41  ;;  %298 = vst.msk [vmem:[#allocation3 + $0x88] sm:$0xff] %vm280_vm2, %v263_v41 }
  0x32   : > { %281 = vst.msk [vmem:[#allocation3] sm:$0xff] %vm280_vm2, %v246_v42  ;;  %335 = vmatpush.msra.mxu0 %v246_v42 }
  0x33   : > { %355 = vmatpush.msra.mxu1 %v262_v43  ;;  %297 = vst.msk [vmem:[#allocation3 + $0x80] sm:$0xff] %vm280_vm2, %v262_v43  ;;  %771 = vmatmul.msk.f32.vlgmr.msra.gmra.mxu0 %vm973_vm0, %v920_v44 }
  0x34   : > { %772 = vmatmul.msk.f32.vlgmr.msra.gmra.mxu1 %vm977_vm1, %v920_v44  ;;  %318 = vst.msk [vmem:[#allocation4] sm:$0xf] %vm317_vm3, %v921_v45 }
  0x3b   : > { %v319_v51 = vld [vmem:[#allocation4] sm:$0xf] }
  0x8a   : > { %v371_v55 = vpop.permute.xlu0 %370 }
  0xb0   : > { %v337_v50 = vpop.f32.mrf.mxu0 }
  0xb1   : > { %v357_v52 = vpop.f32.mrf.mxu1 }
  0xb2   : > { %v358_v53 = vadd.f32 %v357_v52, %v337_v50 }
  0xb4   : > { %v360_v54 = vadd.f32 %v358_v53, %v319_v51 }
  0xb6   : > { %362 = vst.msk [vmem:[#allocation4] sm:$0xf] %vm317_vm3, %v360_v54 }
  0xbd   : > { %v366_v56 = vld [vmem:[#allocation4] sm:$0xf] }
  0xbe   : > { %v373_v57 = vmul.f32 %v371_v55, %v366_v56 }
  0xc0   : > { %773 = vmatmul.msk.f32.vlgmr.msra.gmra.mxu2 %vm280_vm2, %v373_v57 }
 0x143   : > { %v398_v58 = vpop.f32.mrf.mxu2 }
 0x144   : > { %852 = vtanh.f32 %v398_v58 }
 0x14a   : > { %v853_v59 = vpop.eup %852 }
 0x14b   : > { %402 = vst.msk [vmem:[#allocation2] sm:$0xf] %vm317_vm3, %v853_v59 }
 0x14c PF: > { %p774_p5 = scmp.ne.s32.totalorder %s908_s15, 1 }
 0x14e   : > { %406 = sbr.rel (%p774_p5) target bundleno = 712 (0x2c8), region = 52 }
 0x153   : > { %v424_v60 = vld [vmem:[#allocation3 + $0x78] sm:$0xff]  ;;  %vm448_vm4 = vcmask 261120   ;;  %v423_v62 = vld [vmem:[#allocation3 + $0x70] sm:$0xff]  ;;  %v422_v0 = vld [vmem:[#allocation3 + $0x68] sm:$0xff]  ;;  %vm590_vm5 = vcmask 1043456   ;;  %vm445_vm14 = vcmask 257024  }
 0x154   : > { %v440_v61 = vld [vmem:[#allocation3 + $0xf8] sm:$0xff]  ;;  %775 = vmatpush.xpose.msk.msra.mxu0 %vm448_vm4, %v424_v60  ;;  %v439_v63 = vld [vmem:[#allocation3 + $0xf0] sm:$0xff]  ;;  %646 = vmatpush.msra.mxu2 %v424_v60  ;;  %v438_v1 = vld [vmem:[#allocation3 + $0xe8] sm:$0xff] }
 0x155   : > { %792 = vmatpush.xpose.msk.msra.mxu1 %vm448_vm4, %v440_v61  ;;  %666 = vmatpush.msra.mxu3 %v440_v61  ;;  %v421_v2 = vld [vmem:[#allocation3 + $0x60] sm:$0xff]  ;;  %v420_v4 = vld [vmem:[#allocation3 + $0x58] sm:$0xff]  ;;  %v419_v6 = vld [vmem:[#allocation3 + $0x50] sm:$0xff] }
 0x156   : > { %647 = vmatpush.msra.mxu2 %v423_v62  ;;  %v437_v3 = vld [vmem:[#allocation3 + $0xe0] sm:$0xff]  ;;  %v436_v5 = vld [vmem:[#allocation3 + $0xd8] sm:$0xff]  ;;  %v435_v7 = vld [vmem:[#allocation3 + $0xd0] sm:$0xff] }
 0x157   : > { %667 = vmatpush.msra.mxu3 %v439_v63  ;;  %v418_v10 = vld [vmem:[#allocation3 + $0x48] sm:$0xff]  ;;  %v417_v12 = vld [vmem:[#allocation3 + $0x40] sm:$0xff]  ;;  %v416_v14 = vld [vmem:[#allocation3 + $0x38] sm:$0xff] }
 0x158   : > { %776 = vmatpush.xpose.msk.msra.mxu0 %vm448_vm4, %v423_v62  ;;  %648 = vmatpush.msra.mxu2 %v422_v0  ;;  %v434_v11 = vld [vmem:[#allocation3 + $0xc8] sm:$0xff]  ;;  %v433_v13 = vld [vmem:[#allocation3 + $0xc0] sm:$0xff]  ;;  %v432_v15 = vld [vmem:[#allocation3 + $0xb8] sm:$0xff] }
 0x159   : > { %793 = vmatpush.xpose.msk.msra.mxu1 %vm448_vm4, %v439_v63  ;;  %668 = vmatpush.msra.mxu3 %v438_v1  ;;  %v415_v16 = vld [vmem:[#allocation3 + $0x30] sm:$0xff]  ;;  %v414_v18 = vld [vmem:[#allocation3 + $0x28] sm:$0xff]  ;;  %v413_v20 = vld [vmem:[#allocation3 + $0x20] sm:$0xff] }
 0x15a   : > { %649 = vmatpush.msra.mxu2 %v421_v2  ;;  %v431_v17 = vld [vmem:[#allocation3 + $0xb0] sm:$0xff]  ;;  %v430_v19 = vld [vmem:[#allocation3 + $0xa8] sm:$0xff]  ;;  %v429_v21 = vld [vmem:[#allocation3 + $0xa0] sm:$0xff] }
 0x15b   : > { %669 = vmatpush.msra.mxu3 %v437_v3  ;;  %v412_v22 = vld [vmem:[#allocation3 + $0x18] sm:$0xff]  ;;  %v411_v24 = vld [vmem:[#allocation3 + $0x10] sm:$0xff]  ;;  %v410_v26 = vld [vmem:[#allocation3 + $0x8] sm:$0xff] }
 0x15c   : > { %777 = vmatpush.xpose.msk.msra.mxu0 %vm448_vm4, %v422_v0  ;;  %650 = vmatpush.msra.mxu2 %v420_v4  ;;  %v428_v23 = vld [vmem:[#allocation3 + $0x98] sm:$0xff]  ;;  %v427_v25 = vld [vmem:[#allocation3 + $0x90] sm:$0xff]  ;;  %v426_v27 = vld [vmem:[#allocation3 + $0x88] sm:$0xff] }
 0x15d   : > { %794 = vmatpush.xpose.msk.msra.mxu1 %vm448_vm4, %v438_v1  ;;  %670 = vmatpush.msra.mxu3 %v436_v5  ;;  %v409_v28 = vld [vmem:[#allocation3] sm:$0xff]  ;;  %v447_v30 = vld [vmem:[#allocation2] sm:$0xf] }
 0x15e   : > { %651 = vmatpush.msra.mxu2 %v419_v6  ;;  %v425_v29 = vld [vmem:[#allocation3 + $0x80] sm:$0xff] }
 0x15f   : > { %671 = vmatpush.msra.mxu3 %v435_v7 }
 0x160   : > { %778 = vmatpush.xpose.msk.msra.mxu0 %vm448_vm4, %v421_v2  ;;  %652 = vmatpush.msra.mxu2 %v418_v10 }
 0x161   : > { %795 = vmatpush.xpose.msk.msra.mxu1 %vm448_vm4, %v437_v3  ;;  %672 = vmatpush.msra.mxu3 %v434_v11 }
 0x162   : > { %653 = vmatpush.msra.mxu2 %v417_v12 }
 0x163   : > { %673 = vmatpush.msra.mxu3 %v433_v13 }
 0x164   : > { %779 = vmatpush.xpose.msk.msra.mxu0 %vm448_vm4, %v420_v4  ;;  %654 = vmatpush.msra.mxu2 %v416_v14 }
 0x165   : > { %796 = vmatpush.xpose.msk.msra.mxu1 %vm448_vm4, %v436_v5  ;;  %674 = vmatpush.msra.mxu3 %v432_v15 }
 0x166   : > { %655 = vmatpush.msra.mxu2 %v415_v16 }
 0x167   : > { %675 = vmatpush.msra.mxu3 %v431_v17 }
 0x168   : > { %780 = vmatpush.xpose.msk.msra.mxu0 %vm448_vm4, %v419_v6  ;;  %656 = vmatpush.msra.mxu2 %v414_v18 }
 0x169   : > { %797 = vmatpush.xpose.msk.msra.mxu1 %vm448_vm4, %v435_v7  ;;  %676 = vmatpush.msra.mxu3 %v430_v19 }
 0x16a   : > { %657 = vmatpush.msra.mxu2 %v413_v20 }
 0x16b   : > { %677 = vmatpush.msra.mxu3 %v429_v21 }
 0x16c   : > { %781 = vmatpush.xpose.msk.msra.mxu0 %vm448_vm4, %v418_v10  ;;  %658 = vmatpush.msra.mxu2 %v412_v22 }
 0x16d   : > { %798 = vmatpush.xpose.msk.msra.mxu1 %vm448_vm4, %v434_v11  ;;  %678 = vmatpush.msra.mxu3 %v428_v23 }
 0x16e   : > { %659 = vmatpush.msra.mxu2 %v411_v24 }
 0x16f   : > { %679 = vmatpush.msra.mxu3 %v427_v25 }
 0x170   : > { %782 = vmatpush.xpose.msk.msra.mxu0 %vm448_vm4, %v417_v12  ;;  %660 = vmatpush.msra.mxu2 %v410_v26 }
 0x171   : > { %799 = vmatpush.xpose.msk.msra.mxu1 %vm448_vm4, %v433_v13  ;;  %680 = vmatpush.msra.mxu3 %v426_v27 }
 0x172   : > { %661 = vmatpush.msra.mxu2 %v409_v28 }
 0x173   : > { %681 = vmatpush.msra.mxu3 %v425_v29 }
 0x174   : > { %783 = vmatpush.xpose.msk.msra.mxu0 %vm448_vm4, %v416_v14 }
 0x175   : > { %800 = vmatpush.xpose.msk.msra.mxu1 %vm448_vm4, %v432_v15  ;;  %v922_v15 = vmov 0.0  }
 0x176   : > { %446 = vst.msk [vmem:[#allocation4] sm:$0xf] %vm445_vm14, %v922_v15 }
 0x178   : > { %784 = vmatpush.xpose.msk.msra.mxu0 %vm448_vm4, %v415_v16 }
 0x179   : > { %801 = vmatpush.xpose.msk.msra.mxu1 %vm448_vm4, %v431_v17 }
 0x17c   : > { %785 = vmatpush.xpose.msk.msra.mxu0 %vm448_vm4, %v414_v18 }
 0x17d   : > { %802 = vmatpush.xpose.msk.msra.mxu1 %vm448_vm4, %v430_v19  ;;  %v643_v17 = vld [vmem:[#allocation4] sm:$0xf] }
 0x180   : > { %786 = vmatpush.xpose.msk.msra.mxu0 %vm448_vm4, %v413_v20 }
 0x181   : > { %803 = vmatpush.xpose.msk.msra.mxu1 %vm448_vm4, %v429_v21 }
 0x184   : > { %787 = vmatpush.xpose.msk.msra.mxu0 %vm448_vm4, %v412_v22 }
 0x185   : > { %804 = vmatpush.xpose.msk.msra.mxu1 %vm448_vm4, %v428_v23 }
 0x188   : > { %788 = vmatpush.xpose.msk.msra.mxu0 %vm448_vm4, %v411_v24 }
 0x189   : > { %805 = vmatpush.xpose.msk.msra.mxu1 %vm448_vm4, %v427_v25 }
 0x18c   : > { %789 = vmatpush.xpose.msk.msra.mxu0 %vm448_vm4, %v410_v26 }
 0x18d   : > { %806 = vmatpush.xpose.msk.msra.mxu1 %vm448_vm4, %v426_v27 }
 0x190   : > { %790 = vmatpush.xpose.msk.msra.mxu0 %vm448_vm4, %v409_v28 }
 0x191   : > { %807 = vmatpush.xpose.msk.msra.mxu1 %vm448_vm4, %v425_v29 }
 0x193   : > { %791 = vmatmul.msk.f32.vlgmr.msra.gmra.mxu0 %vm448_vm4, %v447_v30 }
 0x194   : > { %808 = vmatmul.msk.f32.vlgmr.msra.gmra.mxu1 %vm448_vm4, %v447_v30 }
 0x210   : > { %v565_v31 = vpop.f32.mrf.mxu0 }
 0x211   : > { %v585_v32 = vpop.f32.mrf.mxu1  ;;  %v588_v33 = vmul.f32 %v983_v8, %v565_v31 }
 0x212   : > { %v589_v34 = vmul.f32 %v987_v9, %v585_v32 }
 0x213   : > { %v591_v35 = vsel %vm590_vm5, %v588_v33, 0.0 }
 0x214   : > { %v598_v36 = vsel %vm590_vm5, %v589_v34, 0.0  ;;  %v592_v37 = vrot.slane %v591_v35, 4 }
 0x215   : > { %v599_v38 = vrot.slane %v598_v36, 4 }
 0x216   : > { %v593_v39 = vadd.f32 %v592_v37, %v591_v35 }
 0x217   : > { %v600_v40 = vadd.f32 %v599_v38, %v598_v36 }
 0x218   : > { %v594_v41 = vrot.slane %v593_v39, 2 }
 0x219   : > { %v601_v42 = vrot.slane %v600_v40, 2 }
 0x21a   : > { %v595_v43 = vadd.f32 %v594_v41, %v593_v39 }
 0x21b   : > { %v602_v44 = vadd.f32 %v601_v42, %v600_v40 }
 0x21c   : > { %v596_v45 = vrot.slane %v595_v43, 1 }
 0x21d   : > { %v603_v46 = vrot.slane %v602_v44, 1 }
 0x21e   : > { %v597_v47 = vadd.f32 %v596_v45, %v595_v43 }
 0x21f   : > { %v604_v48 = vadd.f32 %v603_v46, %v602_v44 }
 0x220   : > { %v809_v49 = vmul.f32 -1.442695, %v597_v47 }
 0x221   : > { %v810_v50 = vmul.f32 -1.442695, %v604_v48 }
 0x222   : > { %854 = vpow2.f32 %v809_v49 }
 0x223   : > { %856 = vpow2.f32 %v810_v50 }
 0x228   : > { %v855_v51 = vpop.eup %854 }
 0x229   : > { %v857_v52 = vpop.eup %856  ;;  %v611_v53 = vadd.f32 1.0, %v855_v51 }
 0x22a   : > { %v612_v54 = vadd.f32 1.0, %v857_v52 }
 0x22b   : > { %858 = vrcp.f32 %v611_v53  ;;  %v624_v60 = vand.u32 2147483648, %v611_v53  ;;  %v622_v63 = vand.u32 2147483647, %v611_v53  ;;  %vm618_vm8 = vweird.f32 %v611_v53 }
 0x22c   : > { %860 = vrcp.f32 %v612_v54  ;;  %v639_v0 = vand.u32 2147483648, %v612_v54  ;;  %v637_v2 = vand.u32 2147483647, %v612_v54  ;;  %vm633_vm10 = vweird.f32 %v612_v54 }
 0x22d   : > { %v625_v4 = vor.u32 1.1754944e-38, %v624_v60  ;;  %vm623_vm11 = vcmp.eq.f32.partialorder %v622_v63, 8.507059e+37 }
 0x22e   : > { %v640_v7 = vor.u32 1.1754944e-38, %v639_v0  ;;  %vm638_vm13 = vcmp.eq.f32.partialorder %v637_v2, 8.507059e+37 }
 0x231   : > { %v859_v55 = vpop.eup %858 }
 0x232   : > { %v861_v56 = vpop.eup %860  ;;  %v614_v57 = vmul.f32 %v859_v55, %v611_v53  ;;  %vm619_vm6 = vweird.f32 %v859_v55 }
 0x233   : > { %v629_v58 = vmul.f32 %v861_v56, %v612_v54  ;;  %vm634_vm7 = vweird.f32 %v861_v56  ;;  %vm620_vm9 = vmor %vm618_vm8, %vm619_vm6 }
 0x234   : > { %v615_v59 = vsub.f32 1.0, %v614_v57  ;;  %vm635_vm12 = vmor %vm633_vm10, %vm634_vm7 }
 0x235   : > { %v630_v61 = vsub.f32 1.0, %v629_v58 }
 0x236   : > { %v616_v62 = vmul.f32 %v859_v55, %v615_v59 }
 0x237   : > { %v631_v1 = vmul.f32 %v861_v56, %v630_v61 }
 0x238   : > { %v617_v3 = vadd.f32 %v859_v55, %v616_v62 }
 0x239   : > { %v632_v5 = vadd.f32 %v861_v56, %v631_v1 }
 0x23a   : > { %v621_v6 = vsel %vm620_vm9, %v859_v55, %v617_v3 }
 0x23b   : > { %v626_v10 = vsel %vm623_vm11, %v625_v4, %v621_v6  ;;  %v636_v11 = vsel %vm635_vm12, %v861_v56, %v632_v5 }
 0x23c   : > { %v644_v12 = vmul.f32 %v983_v8, %v626_v10  ;;  %v641_v13 = vsel %vm638_vm13, %v640_v7, %v636_v11 }
 0x23d   : > { %v645_v14 = vmul.f32 %v987_v9, %v641_v13 }
 0x23e   : > { %662 = vmatmul.f32.vlgmr.msra.gmra.mxu2 %v644_v12 }
 0x23f   : > { %682 = vmatmul.f32.vlgmr.msra.gmra.mxu3 %v645_v14 }
 0x2c1   : > { %v663_v16 = vpop.f32.mrf.mxu2 }
 0x2c2   : > { %v683_v18 = vpop.f32.mrf.mxu3 }
 0x2c3   : > { %v684_v19 = vadd.f32 %v683_v18, %v663_v16 }
 0x2c5   : > { %v686_v20 = vadd.f32 %v684_v19, %v643_v17 }
 0x2c7   : > { %688 = vst.msk [vmem:[#allocation4] sm:$0xf] %vm445_vm14, %v686_v20 }
 0x2c8 PF: > { %p819_p6 = scmp.eq.s32.totalorder %s762_s18, 1  ;;  %s697_s8 = sshll.u32 %s1198_s4, 4  ;;  %s698_s8 = int_to_ptr.hbm [resolvable:$true] %s697_s8 }
 0x2c9   : > { %s923_s9 = smov [#allocation4]  }
 0x2ca   : > { %s695_s10 = sshll.u32 %s923_s9, 4  ;;  %s696_s10 = int_to_ptr.vmem [resolvable:$true] %s695_s10 }
 0x2cb   : > { %816 = dma.vmem_to_hbm [thread:$0]  (%p819_p6), %s696_s10, 64, %s698_s8, [#allocation5]  }
 0x2cc   : > { %903 = dma.done.wait (%p819_p6), [#allocation5], 64  }
 0x2cd   : > { %905 = vsyncadd (%p819_p6), [#allocation5], 4294967232 }
 0x2ce PF: > { %s15_s17 = sadd.s32 1, %s916_s17   ;;  %s1203_s15 = smov %s912_s16 }
 0x2cf   : > { %p12_p7 = scmp.ge.s32.totalorder %s15_s17, 4   ;;  %s1204_s16 = smov %s1206_s19 }
 0x2d1   :  { %14 = sbr.rel (!%p12_p7) target bundleno = 2 (0x2), region = 88 }
 0x2d6   :  { %711 = vsyncpa [#allocation5], 1 }
 0x2d7   :  { %713 = vsyncpa [#allocation5 + $0x1], 1 }

</bundles_post_ra>
